<compile_context>
chip_gen: v5e
topology: v5e:2x2
jax: 0.10.0
libtpu: 0.0.40
codegen_flags: <defaults>
</compile_context>

<pallas_src>
import math
from typing import NamedTuple

import jax
import jax.numpy as jnp
from jax.experimental import pallas as pl
from jax.experimental.pallas import tpu as pltpu


def _round_up(x: int, m: int) -> int:
    return (x + m - 1) // m * m


def _pad2d(x, rows, cols):
    pr, pc = rows - x.shape[0], cols - x.shape[1]
    if pr == 0 and pc == 0:
        return x
    return jnp.pad(x, ((0, pr), (0, pc)))


class PreparedAdj(NamedTuple):
    """Padded/cast adjacency plus its block-sparsity schedule (built once)."""
    adj_p: jax.Array        # [n_pad, n_pad], compute dtype
    num_blocks: jax.Array   # [nb_i] int32   : # of nonzero col blocks per row block
    col_idx: jax.Array      # [nb_i * nb_k] int32 : nonzero col-block ids (clamped tail)
    tm: int
    tk: int
    n: int                  # original (unpadded) node count


def prepare_adj(adj, *, tm: int, tk: int, dtype=jnp.float32) -> PreparedAdj:
    """Pad + cast adj once and build the per-row-block nonzero-block schedule."""
    n = adj.shape[0]
    n_pad = _round_up(n, math.lcm(tm, tk))
    adj_p = _pad2d(adj, n_pad, n_pad)
    nb_i, nb_k = n_pad // tm, n_pad // tk

    blocks = adj_p.reshape(nb_i, tm, nb_k, tk)
    mask = jnp.any(blocks != 0, axis=(1, 3))                       # [nb_i, nb_k] bool
    num = jnp.sum(mask, axis=1).astype(jnp.int32)                  # [nb_i]
    # Nonzero column-block indices first (stable sort keeps ascending order).
    order = jnp.argsort((~mask).astype(jnp.int32), axis=1).astype(jnp.int32)
    last = jnp.take_along_axis(order, jnp.maximum(num - 1, 0)[:, None], axis=1)
    kk = jnp.arange(nb_k, dtype=jnp.int32)[None, :]
    # Clamp the tail to the last valid block: repeated block index => no new DMA.
    col = jnp.where(kk < num[:, None], order, last).astype(jnp.int32)

    return PreparedAdj(adj_p.astype(dtype), num, col.reshape(-1), tm, tk, n)


# ------------------- fused out = relu(adj @ (inp @ W)) ----------------------

def _fused_gcn_kernel(num_ref, col_ref, inp_ref, w_ref, adj_ref, out_ref):
    i = pl.program_id(0)
    k = pl.program_id(1)

    @pl.when(k == 0)
    def _():
        out_ref[...] = jnp.zeros_like(out_ref)

    # Skip all-zero adjacency tiles entirely (their index_map is clamped to the
    # previous valid block, so there is no DMA either).
    @pl.when(k < num_ref[i])
    def _():
        # support tile for this column block: (tk, f_out_pad), f32 on the MXU,
        # then cast to the operand dtype so the second matmul stays bf16-capable.
        support = jnp.dot(
            inp_ref[...], w_ref[...], preferred_element_type=jnp.float32
        ).astype(adj_ref.dtype)
        out_ref[...] += jnp.dot(
            adj_ref[...], support, preferred_element_type=jnp.float32
        )

    @pl.when(k == pl.num_programs(1) - 1)
    def _():
        out_ref[...] = jnp.maximum(out_ref[...], 0.0)


def _fused_gcn(inp_p, w_p, prep: PreparedAdj, tm: int, tk: int):
    n_pad, f_in_pad = inp_p.shape
    f_out_pad = w_p.shape[1]
    nb_i, nb_k = n_pad // tm, n_pad // tk
    itemsize = inp_p.dtype.itemsize

    # Advisory cost estimate (dense upper bound, includes support recompute and
    # the per-row-block re-read of inp).
    flops = 2 * n_pad * n_pad * f_out_pad + 2 * nb_i * n_pad * f_in_pad * f_out_pad
    bytes_accessed = (
        n_pad * n_pad * itemsize                  # adj streamed once
        + nb_i * n_pad * f_in_pad * itemsize      # inp re-read per row block
        + f_in_pad * f_out_pad * itemsize         # W (resident, fetched once)
        + n_pad * f_out_pad * 4                   # f32 output
    )

    def inp_map(i, k, num_ref, col_ref):
        return (col_ref[i * nb_k + k], 0)

    def w_map(i, k, num_ref, col_ref):
        return (0, 0)                              # constant index => fetched once

    def adj_map(i, k, num_ref, col_ref):
        return (i, col_ref[i * nb_k + k])

    def out_map(i, k, num_ref, col_ref):
        return (i, 0)                              # invariant over k => resident acc

    return pl.pallas_call(
        _fused_gcn_kernel,
        out_shape=jax.ShapeDtypeStruct((n_pad, f_out_pad), jnp.float32),
        grid_spec=pltpu.PrefetchScalarGridSpec(
            num_scalar_prefetch=2,
            grid=(nb_i, nb_k),
            in_specs=[
                pl.BlockSpec((tk, f_in_pad), inp_map),
                pl.BlockSpec((f_in_pad, f_out_pad), w_map),
                pl.BlockSpec((tm, tk), adj_map),
            ],
            out_specs=pl.BlockSpec((tm, f_out_pad), out_map),
        ),
        compiler_params=pltpu.CompilerParams(
            dimension_semantics=("parallel", "arbitrary"),
            vmem_limit_bytes=32 * 1024 * 1024,     # explicit; fits v7x 64 MiB too
        ),
        cost_estimate=pl.CostEstimate(
            flops=int(flops), transcendentals=0, bytes_accessed=int(bytes_accessed)
        ),
    )(prep.num_blocks, prep.col_idx, inp_p, w_p, prep.adj_p)


# ------------------------------ public wrapper ------------------------------

def _auto_tile(n: int) -> int:
    """Tile heuristic: as large as useful (<=512) but keep >=2 row blocks when
    the graph allows it, so v7x's two TensorCores both get work."""
    nb128 = _round_up(n, 128) // 128
    return 128 * min(4, max(1, nb128 // 2))


def graph_convolution(inp, adj, weight, *, compute_dtype=jnp.float32,
                      tm=None, tk=None):
    """GCN forward: relu(adj @ (inp @ W)); dropout p=0.0 (identity).

    `adj` may be a dense [N, N] matrix or a PreparedAdj (pad/cast/block-schedule
    amortized across calls).  N / F_in / F_out are zero-padded to lane-dense
    multiples of the tile sizes (zero rows/cols do not change the result).
    Accumulation is always f32; operands are `compute_dtype` (bf16 supported).
    """
    n, f_in = inp.shape
    f_out = weight.shape[1]

    if isinstance(adj, PreparedAdj):
        prep = adj
        tm, tk = prep.tm, prep.tk
        if prep.adj_p.dtype != compute_dtype:
            prep = prep._replace(adj_p=prep.adj_p.astype(compute_dtype))
    else:
        if tm is None:
            tm = _auto_tile(n)
        if tk is None:
            tk = tm
        prep = prepare_adj(adj, tm=tm, tk=tk, dtype=compute_dtype)
    assert prep.n == n, "prepared adjacency does not match input node count"

    n_pad = prep.adj_p.shape[0]
    f_in_pad = _round_up(f_in, 128)
    f_out_pad = _round_up(f_out, 128)

    inp_p = _pad2d(inp, n_pad, f_in_pad).astype(compute_dtype)
    w_p = _pad2d(weight, f_in_pad, f_out_pad).astype(compute_dtype)

    out_p = _fused_gcn(inp_p, w_p, prep, tm, tk)       # [n_pad, f_out_pad] f32
    return out_p[:n, :f_out]


def xavier_uniform(key, fan_in, fan_out, dtype=jnp.float32):
    bound = jnp.sqrt(6.0 / (fan_in + fan_out))
    return jax.random.uniform(key, (fan_in, fan_out), dtype,
                              minval=-bound, maxval=bound)


if __name__ == "__main__":
    # Small GCN with non-aligned shapes to exercise padding + multi-block grid.
    N, F_IN, F_OUT = 200, 48, 96

    key = jax.random.PRNGKey(0)
    k_inp, k_adj, k_w = jax.random.split(key, 3)

    inp = jax.random.normal(k_inp, (N, F_IN), dtype=jnp.float32)

    # Deterministic synthetic normalized adjacency (dense): A_hat = D^-1 (A + I)
    a = (jax.random.uniform(k_adj, (N, N)) < 0.1).astype(jnp.float32)
    a = jnp.maximum(a, a.T) + jnp.eye(N, dtype=jnp.float32)
    adj = a / jnp.sum(a, axis=1, keepdims=True)

    weight = xavier_uniform(k_w, F_IN, F_OUT)

    # Plain-JAX reference.
    ref = jnp.maximum(adj @ (inp @ weight), 0.0)

    # 1) Default auto tiles (128 here -> 2x2 block grid, exercises the k loop).
    out_f32 = jax.block_until_ready(
        graph_convolution(inp, adj, weight, compute_dtype=jnp.float32))
    assert out_f32.shape == (N, F_OUT)
    assert jnp.allclose(out_f32, ref, atol=1e-4, rtol=1e-4)

    # 2) Single large block (tm=tk=256) exercises the one-shot path.
    out_big = jax.block_until_ready(
        graph_convolution(inp, adj, weight, compute_dtype=jnp.float32,
                          tm=256, tk=256))
    assert jnp.allclose(out_big, ref, atol=1e-4, rtol=1e-4)

    # 3) Block-sparse path: zero the cross-half couplings so two of the four
    #    128x128 adjacency blocks are entirely zero and get skipped.
    half_mask = (jnp.arange(N)[:, None] < 128) == (jnp.arange(N)[None, :] < 128)
    adj_sparse = adj * half_mask.astype(jnp.float32)
    ref_sparse = jnp.maximum(adj_sparse @ (inp @ weight), 0.0)
    prep_sp = prepare_adj(adj_sparse, tm=128, tk=128, dtype=jnp.float32)
    assert prep_sp.num_blocks.tolist() == [1, 1]        # off-diagonal blocks skipped
    out_sparse = jax.block_until_ready(
        graph_convolution(inp, prep_sp, weight, compute_dtype=jnp.float32))
    assert jnp.allclose(out_sparse, ref_sparse, atol=1e-4, rtol=1e-4)

    # 4) bf16-operand / f32-accumulate path (throughput mode on v6e/v7x).
    out_bf16 = jax.block_until_ready(
        graph_convolution(inp, adj, weight, compute_dtype=jnp.bfloat16))
    assert out_bf16.shape == (N, F_OUT)
    assert jnp.allclose(out_bf16, ref, atol=5e-2, rtol=5e-2)

    print("KERNEL_OK")
</pallas_src>

<mosaic_0001>
module attributes {stable_mosaic.version = 11 : i64} {
  func.func @_fused_gcn_kernel(%arg0: i32, %arg1: i32, %arg2: memref<2xi32, #tpu.memory_space<smem>>, %arg3: memref<4xi32, #tpu.memory_space<smem>>, %arg4: memref<128x128xf32, #tpu.memory_space<vmem>>, %arg5: memref<128x128xf32, #tpu.memory_space<vmem>>, %arg6: memref<128x128xf32, #tpu.memory_space<vmem>>, %arg7: memref<128x128xf32, #tpu.memory_space<vmem>>) attributes {dimension_semantics = [#tpu.dimension_semantics<parallel>, #tpu.dimension_semantics<arbitrary>], iteration_bounds = array<i64: 2, 2>, scalar_prefetch = 2 : i64, scratch_operands = 0 : i64, tpu.core_type = #tpu.core_type<tc>, window_params = [{transform_indices = @transform_0, window_bounds = array<i64: 128, 128>}, {pipeline_mode = #tpu.pipeline_mode<synchronous>, transform_indices = @transform_1, window_bounds = array<i64: 128, 128>}, {transform_indices = @transform_2, window_bounds = array<i64: 128, 128>}, {transform_indices = @transform_3, window_bounds = array<i64: 128, 128>}]} {
    %c0_i32 = arith.constant 0 : i32
    %0 = arith.cmpi eq, %arg1, %c0_i32 : i32
    %1 = arith.extui %0 : i1 to i32
    %c0_i32_0 = arith.constant 0 : i32
    %2 = arith.cmpi ne, %1, %c0_i32_0 : i32
    scf.if %2 {
      %cst = arith.constant 0.000000e+00 : f32
      %11 = vector.broadcast %cst : f32 to vector<128x128xf32>
      %c0 = arith.constant 0 : index
      %c0_3 = arith.constant 0 : index
      %12 = vector.load %arg7[%c0, %c0_3] : memref<128x128xf32, #tpu.memory_space<vmem>>, vector<128x128xf32>
      tpu.vector_store %arg7[%c0, %c0_3], %11 {strides = array<i32>} : memref<128x128xf32, #tpu.memory_space<vmem>>, vector<128x128xf32>,
    } else {
    }
    %3 = arith.index_cast %arg0 : i32 to index
    %4 = memref.load %arg2[%3] : memref<2xi32, #tpu.memory_space<smem>>
    %5 = arith.cmpi slt, %arg1, %4 : i32
    %6 = arith.extui %5 : i1 to i32
    %c0_i32_1 = arith.constant 0 : i32
    %7 = arith.cmpi ne, %6, %c0_i32_1 : i32
    scf.if %7 {
      %c0 = arith.constant 0 : index
      %c0_3 = arith.constant 0 : index
      %11 = vector.load %arg4[%c0, %c0_3] : memref<128x128xf32, #tpu.memory_space<vmem>>, vector<128x128xf32>
      %c0_4 = arith.constant 0 : index
      %c0_5 = arith.constant 0 : index
      %12 = vector.load %arg5[%c0_4, %c0_5] : memref<128x128xf32, #tpu.memory_space<vmem>>, vector<128x128xf32>
      %cst = arith.constant dense<0.000000e+00> : vector<128x128xf32>
      %13 = tpu.matmul %11, %12, %cst {dimension_numbers = #tpu.dot_dimension_numbers<[1], [0], [0], [1], [0, 0, 1, 1], [], []>} : vector<128x128xf32>, vector<128x128xf32>, vector<128x128xf32> -> vector<128x128xf32>
      %c0_6 = arith.constant 0 : index
      %c0_7 = arith.constant 0 : index
      %14 = vector.load %arg7[%c0_6, %c0_7] : memref<128x128xf32, #tpu.memory_space<vmem>>, vector<128x128xf32>
      %c0_8 = arith.constant 0 : index
      %c0_9 = arith.constant 0 : index
      %15 = vector.load %arg6[%c0_8, %c0_9] : memref<128x128xf32, #tpu.memory_space<vmem>>, vector<128x128xf32>
      %cst_10 = arith.constant dense<0.000000e+00> : vector<128x128xf32>
      %16 = tpu.matmul %15, %13, %cst_10 {dimension_numbers = #tpu.dot_dimension_numbers<[1], [0], [0], [1], [0, 0, 1, 1], [], []>} : vector<128x128xf32>, vector<128x128xf32>, vector<128x128xf32> -> vector<128x128xf32>
      %17 = arith.addf %14, %16 : vector<128x128xf32>
      %c0_11 = arith.constant 0 : index
      %c0_12 = arith.constant 0 : index
      %18 = vector.load %arg7[%c0_11, %c0_12] : memref<128x128xf32, #tpu.memory_space<vmem>>, vector<128x128xf32>
      tpu.vector_store %arg7[%c0_11, %c0_12], %17 {strides = array<i32>} : memref<128x128xf32, #tpu.memory_space<vmem>>, vector<128x128xf32>,
    } else {
    }
    %c1_i32 = arith.constant 1 : i32
    %8 = arith.cmpi eq, %arg1, %c1_i32 : i32
    %9 = arith.extui %8 : i1 to i32
    %c0_i32_2 = arith.constant 0 : i32
    %10 = arith.cmpi ne, %9, %c0_i32_2 : i32
    scf.if %10 {
      %c0 = arith.constant 0 : index
      %c0_3 = arith.constant 0 : index
      %11 = vector.load %arg7[%c0, %c0_3] : memref<128x128xf32, #tpu.memory_space<vmem>>, vector<128x128xf32>
      %cst = arith.constant 0.000000e+00 : f32
      %12 = vector.broadcast %cst : f32 to vector<128x128xf32>
      %13 = arith.maximumf %11, %12 : vector<128x128xf32>
      %c0_4 = arith.constant 0 : index
      %c0_5 = arith.constant 0 : index
      %14 = vector.load %arg7[%c0_4, %c0_5] : memref<128x128xf32, #tpu.memory_space<vmem>>, vector<128x128xf32>
      tpu.vector_store %arg7[%c0_4, %c0_5], %13 {strides = array<i32>} : memref<128x128xf32, #tpu.memory_space<vmem>>, vector<128x128xf32>,
    } else {
    }
    return
  }
  func.func @transform_0(%arg0: i32, %arg1: i32, %arg2: memref<2xi32, #tpu.memory_space<smem>>, %arg3: memref<4xi32, #tpu.memory_space<smem>>) -> (i32, i32) {
    %c2_i32 = arith.constant 2 : i32
    %0 = arith.muli %arg0, %c2_i32 : i32
    %1 = arith.addi %0, %arg1 : i32
    %2 = arith.index_cast %1 : i32 to index
    %3 = memref.load %arg3[%2] : memref<4xi32, #tpu.memory_space<smem>>
    %c0_i32 = arith.constant 0 : i32
    %c0_i32_0 = arith.constant 0 : i32
    return %3, %c0_i32 : i32, i32
  }
  func.func @transform_1(%arg0: i32, %arg1: i32, %arg2: memref<2xi32, #tpu.memory_space<smem>>, %arg3: memref<4xi32, #tpu.memory_space<smem>>) -> (i32, i32) {
    %c0_i32 = arith.constant 0 : i32
    %c0_i32_0 = arith.constant 0 : i32
    %c0_i32_1 = arith.constant 0 : i32
    return %c0_i32, %c0_i32_0 : i32, i32
  }
  func.func @transform_2(%arg0: i32, %arg1: i32, %arg2: memref<2xi32, #tpu.memory_space<smem>>, %arg3: memref<4xi32, #tpu.memory_space<smem>>) -> (i32, i32) {
    %c2_i32 = arith.constant 2 : i32
    %0 = arith.muli %arg0, %c2_i32 : i32
    %1 = arith.addi %0, %arg1 : i32
    %2 = arith.index_cast %1 : i32 to index
    %3 = memref.load %arg3[%2] : memref<4xi32, #tpu.memory_space<smem>>
    %c0_i32 = arith.constant 0 : i32
    return %arg0, %3 : i32, i32
  }
  func.func @transform_3(%arg0: i32, %arg1: i32, %arg2: memref<2xi32, #tpu.memory_space<smem>>, %arg3: memref<4xi32, #tpu.memory_space<smem>>) -> (i32, i32) {
    %c0_i32 = arith.constant 0 : i32
    %c0_i32_0 = arith.constant 0 : i32
    return %arg0, %c0_i32 : i32, i32
  }
}

</mosaic_0001>

<bundles_post_ra>
// kernel: tpu_custom_call.1
= control target key start
LH: loop header
LB: loop body
LE: loop exit
PB: predicated region body
PF: predicated region fallthrough
CT: control target
= control target key end

     0   :  { %s1236_s24 = smov [#allocation3]   ;;  %s1237_s25 = smov [#allocation4]   ;;  %s1743_s0 = inlined_call_operand.hbm [shape: s32[2], index: 0, kind: input, shape index: {}]   ;;  %s1744_s2 = inlined_call_operand.hbm [shape: f32[256,128], index: 2, kind: input, shape index: {}]   ;;  %s1745_s3 = inlined_call_operand.hbm [shape: f32[128,128], index: 3, kind: input, shape index: {}]   ;;  %s1746_s4 = inlined_call_operand.hbm [shape: f32[256,256], index: 4, kind: input, shape index: {}]   ;;  %s1747_s5 = inlined_call_operand.hbm [shape: f32[256,128], index: 5, kind: output, shape index: {}]   ;;  %s1748_s1 = inlined_call_operand.hbm [shape: s32[4], index: 1, kind: input, shape index: {}]  }
   0x1   :  { %1762 = sst [smem:[#allocation33_spill]] %s1744_s2  ;;  %s11_s20 = sshll.u32 %s1743_s0, 4  ;;  %s12_s20 = int_to_ptr.hbm [resolvable:$true] %s11_s20 }
   0x2   :  { %1763 = sst [smem:[#allocation34_spill]] %s1745_s3  ;;  %s16_s23 = sshll.u32 %s1748_s1, 4  ;;  %s17_s23 = int_to_ptr.hbm [resolvable:$true] %s16_s23 }
   0x3   :  { %1764 = sst [smem:[#allocation35_spill]] %s1746_s4 }
   0x4   :  { %1765 = sst [smem:[#allocation36_spill]] %s1747_s5 }
   0x5   :  { %14 = dma.hbm_to_smem %s12_s20, 16, %s1236_s24, [#allocation2] }
   0x6   :  { %19 = dma.hbm_to_smem %s17_s23, 16, %s1237_s25, [#allocation2] }
   0x7   :  { %1162 = dma.done.wait [#allocation2], 32 }
   0x8   :  { %1163 = vsyncadd [#allocation2], 4294967264 }
   0x9   :  { %22 = sfence }
   0xa   :  { %23 = vsyncpa [#allocation6], 0 }
   0xb   :  { %25 = vsyncpa [#allocation6 + $0x1], 0 }
   0xc   :  { %26 = vsyncpa [#allocation9], 0 }
   0xd   :  { %27 = vsyncpa [#allocation7], 0 }
   0xe   :  { %29 = vsyncpa [#allocation7 + $0x1], 0  ;;  %s1281_s26 = smov 0   ;;  %s1283_s0 = smov 0  }
   0xf   :  { %s1285_s27 = smov 0   ;;  %s1287_s1 = smov 0  }
  0x10   :  { %s1289_s28 = smov 0   ;;  %s1291_s29 = smov 0  }
  0x11   :  { %s1293_s30 = smov 0   ;;  %s1295_s6 = smov 0  }
  0x12   :  { %s1297_s7 = smov 0   ;;  %s1299_s8 = smov 0  }
  0x13   :  { %s1301_s9 = smov 0   ;;  %s1303_s10 = smov 0  }
  0x14   :  { %s1305_s11 = smov 0   ;;  %s1307_s12 = smov 0  }
  0x15 LB: > { %1766 = sst [smem:[#allocation21_spill]] %s1190_s27  ;;  %s44_s13 = sadd.s32 1, %s1226_s10  ;;  %s1234_s12 = sphi %s1307_s12, %s35_s12   ;;  %s1230_s11 = sphi %s1305_s11, %s1811_s11   ;;  %s1226_s10 = sphi %s1303_s10, %s1810_s10   ;;  %s1222_s9 = sphi %s1301_s9, %s1809_s9   ;;  %s1218_s8 = sphi %s1299_s8, %s1808_s8   ;;  %s1214_s7 = sphi %s1297_s7, %s1807_s7   ;;  %s1210_s6 = sphi %s1295_s6, %s1817_s6   ;;  %s1206_s30 = sphi %s1293_s30, %s1816_s30   ;;  %s1202_s29 = sphi %s1291_s29, %s1805_s29   ;;  %s1198_s28 = sphi %s1289_s28, %s1815_s28   ;;  %s1194_s1 = sphi %s1287_s1, %s1814_s1   ;;  %s1190_s27 = sphi %s1285_s27, %s1803_s27   ;;  %s1186_s0 = sphi %s1283_s0, %s1813_s0   ;;  %s1182_s26 = sphi %s1281_s26, %s1812_s26  }
  0x16   : > { %1767 = sst [smem:[#allocation22_spill]] %s1202_s29  ;;  %s47_s14 = sadd.s32 1, %s1230_s11 }
  0x17   : > { %1768 = sst [smem:[#allocation23_spill]] %s1214_s7  ;;  %p45_p0 = scmp.ge.s32.totalorder %s44_s13, 2 }
  0x18   : > { %1769 = sst [smem:[#allocation24_spill]] %s1218_s8  ;;  %s742_s15 = sshll.u32 %s1230_s11, 1 }
  0x19   : > { %1770 = sst [smem:[#allocation25_spill]] %s1222_s9  ;;  %s1355_s16 = sadd.s32 %s1226_s10, %s742_s15 }
  0x1a   : > { %1771 = sst [smem:[#allocation26_spill]] %s1226_s10  ;;  %s60_s17 = sadd.s32 1, %s1214_s7 }
  0x1b   : > { %1772 = sst [smem:[#allocation27_spill]] %s1230_s11  ;;  %s1819_s13 = smov (%p45_p0, %s44_s13), 0 }
  0x1c   : > { %1773 = sst [smem:[#allocation28_spill]] %s1819_s13  ;;  %s1821_s14 = smov (!%p45_p0, %s47_s14), %s1230_s11 }
  0x1d   : > { %s53_s18 = sld [smem:[#allocation4 + %s1355_s16]]  ;;  %p67_p1 = scmp.ne.s32.totalorder %s1214_s7, %s1210_s6 }
  0x1e   : > { %p49_p2 = scmp.ge.s32.totalorder %s1821_s14, 2  ;;  %p68_p3 = scmp.eq.s32.totalorder %s1234_s12, 0 }
  0x1f   : > { %p73_p4 = scmp.ne.s32.totalorder %s1210_s6, %s1206_s30  ;;  %s1368_s19 = sld [smem:[#allocation4 + %s1355_s16]] }
  0x20   : > { %s1823_s14 = smov (%p49_p2, %s1821_s14), 0  ;;  %p1374_p5 = por %p68_p3, %p67_p1 }
  0x21   : > { %1774 = sst [smem:[#allocation29_spill]] %s1823_s14  ;;  %s743_s21 = sshll.u32 %s1823_s14, 1 }
  0x22   : > { %s1381_s22 = ssub.s32 %s1230_s11, %s1823_s14  ;;  %s55_s23 = sadd.s32 %s743_s21, %s1819_s13 }
  0x23   : > { %p139_p6 = scmp.eq.s32.totalorder %s1381_s22, 0  ;;  %s56_s24 = sld [smem:[#allocation4 + %s55_s23]] }
  0x24   : > { %s1385_s25 = sld [smem:[#allocation4 + %s55_s23]]  ;;  %p840_p7 = scmp.lt.s32.totalorder %s1234_s12, 4 }
  0x25   : > { %s192_s15 = sand.u32 1, %s1234_s12   ;;  %s194_s10 = sand.u32 1, %s1214_s7  }
  0x26   : > { %s749_s5 = sshll.u32 %s194_s10, 7  ;;  %p1394_p8 = pnand %p840_p7, %p1374_p5 }
  0x27   : > { %s196_s13 = scalar_lea.vmem [#allocation5], %s749_s5  ;;  %s1778_s2 = sld [smem:[#allocation33_spill]] }
  0x28   : > { %s1398_s9 = sshll.u32 %s196_s13, 4  ;;  %s1419_s23 = sadd.s32 4294967295, %s1234_s12   ;;  %s208_s9 = int_to_ptr.vmem [resolvable:$true] %s1398_s9 }
  0x29   : > { %s57_s21 = ssub.s32 %s53_s18, %s56_s24  ;;  %p992_p11 = pneg %p1394_p8 }
  0x2a   : > { %p58_p9 = scmp.eq.s32.totalorder %s57_s21, 0 }
  0x2b   : > { %s808_s8 = scalar_select %p1374_p5, [#allocation4], [#allocation12] }
  0x2c   : > { %s1405_s4 = scalar_select %p58_p9, %s1214_s7, %s60_s17  }
  0x2d   : > { %s809_s10 = scalar_select %p1374_p5, %s1355_s16, 0 }
  0x2e   : > { %1777 = sst [smem:[#allocation30_spill]] %s1405_s4  ;;  %s1825_s8 = smov (!%p840_p7, %s808_s8), [#allocation14] }
  0x2f   : > { %s1827_s10 = smov (!%p840_p7, %s809_s10), 0  ;;  %s741_s17 = sadd.s32 4294967294, %s1234_s12  }
  0x30   : > { %s199_s18 = sld [smem:[%s1825_s8 + %s1827_s10]]  ;;  %s1422_s4 = scalar_lea.sflag [#allocation6], %s192_s15 }
  0x36   : > { %s771_s5 = sshll.u32 %s199_s18, 7  ;;  %s995_s18 = scalar_lea.hbm %s1778_s2, 256 }
  0x37   : > { %s204_s11 = scalar_lea.hbm %s1778_s2, %s771_s5 }
  0x38   : > { %s205_s21 = sshll.u32 %s204_s11, 4  ;;  %s206_s21 = int_to_ptr.hbm [resolvable:$true] %s205_s21 }
  0x39   : > { %s988_s20 = sshra.s32 %s206_s21, 4  ;;  %s989_s20 = int_to_ptr.hbm [resolvable:$true] %s988_s20 }
  0x3a   : > { %s990_s7 = scalar_lea.hbm %s989_s20, 128  ;;  %p996_p0 = scmp.lt.s32.totalorder %s989_s20, %s1778_s2 }
  0x3b   : > { %p991_p10 = scmp.ne.s32.totalorder %s989_s20, %s990_s7  ;;  %p997_p1 = scmp.lt.s32.totalorder %s995_s18, %s990_s7 }
  0x3d   : > { %p993_p12 = pnand %p992_p11, %p991_p10  ;;  %p998_p2 = por %p997_p1, %p996_p0 }
  0x3f   : > { %p994_p13 = pneg %p993_p12 }
  0x41   : > { %p999_p5 = pnand %p998_p2, %p994_p13 }
  0x43   : > { %1002 = shalt.err (!%p999_p5)
}
  0x44   : > { %s1756_s15 = smov 128   ;;  %s1758_s7 = smov 8  }
  0x45   : > { %829 = dma.hbm_to_vmem [thread:$0]  (!%p1394_p8), %s206_s21, 2048, %s208_s9, %s1422_s4, %s1756_s15, %s1756_s15, %s1758_s7  }
  0x46   : > { %p1761_p9 = scmp.eq.s32.totalorder %s1419_s23, 0  ;;  %p128_p10 = scmp.ne.s32.totalorder %s1198_s28, %s1194_s1 }
  0x47   : > { %s141_s24 = sadd.s32 1, %s1190_s27  ;;  %p151_p11 = scmp.ne.s32.totalorder %s1190_s27, %s1186_s0 }
  0x48   : > { %p1449_p12 = por %p1761_p9, %p73_p4  ;;  %p1455_p13 = por %p128_p10, %p1761_p9 }
  0x49   : > { %s1462_s14 = scalar_select %p139_p6, %s1190_s27, %s141_s24  }
  0x4a   : > { %p152_p8 = scmp.eq.s32.totalorder %s1419_s23, 3  ;;  %p157_p0 = scmp.ne.s32.totalorder %s1186_s0, %s1182_s26 }
  0x4b   : > { %1781 = sst [smem:[#allocation31_spill]] %s1462_s14  ;;  %p158_p1 = scmp.eq.s32.totalorder %s741_s17, 3 }
  0x4c   : > { %p746_p4 = scmp.ge.s32.totalorder %s1234_s12, 1  ;;  %p1468_p2 = por %p152_p8, %p151_p11 }
  0x4d   : > { %p165_p5 = scmp.lt.s32.totalorder %s1234_s12, 5  ;;  %p1473_p10 = por %p158_p1, %p157_p0 }
  0x4e   : > { %s1785_s3 = sld [smem:[#allocation34_spill]]  ;;  %s1240_s10 = smov [#allocation8]  }
  0x4f   : > { %p1477_p6 = pnand %p746_p4, %p165_p5  ;;  %s178_s18 = sshll.u32 %s1240_s10, 4  ;;  %s179_s18 = int_to_ptr.vmem [resolvable:$true] %s178_s18 }
  0x50   : > { %s1786_s5 = ssub.s32 %s1368_s19, %s1385_s25  ;;  %s1787_s11 = sld [smem:[#allocation27_spill]] }
  0x51   : > { %p820_p11 = pneg %p1477_p6  ;;  %s112_s24 = sor.u32 %s1786_s5, %s1381_s22 }
  0x52   : > { %s115_s15 = sadd.s32 1, %s1202_s29  ;;  %p113_p0 = scmp.eq.s32.totalorder %s112_s24, 0 }
  0x53   : > { %p821_p8 = pnand %p820_p11, %p1761_p9  ;;  %s1788_s21 = smov 128  }
  0x54   : > { %s176_s8 = sshll.u32 %s1785_s3, 4  ;;  %p122_p1 = scmp.ne.s32.totalorder %s1202_s29, %s1198_s28  ;;  %s177_s8 = int_to_ptr.hbm [resolvable:$true] %s176_s8 }
  0x55   : > { %823 = dma.hbm_to_vmem [thread:$0]  (!%p821_p8), %s177_s8, 2048, %s179_s18, [#allocation9], %s1788_s21, %s1788_s21, %s1758_s7  }
  0x56   : > { %s1497_s17 = scalar_select %p113_p0, %s1202_s29, %s115_s15  }
  0x57   : > { %p124_p4 = por %p122_p1, %p68_p3  ;;  %s219_s2 = sand.u32 1, %s1202_s29  }
  0x58   : > { %1789 = sst [smem:[#allocation32_spill]] %s1497_s17  ;;  %s753_s19 = sshll.u32 %s219_s2, 7 }
  0x59   : > { %s811_s10 = scalar_select %p124_p4, [#allocation4], [#allocation13] }
  0x5a   : > { %s1829_s16 = smov (!%p124_p4, %s1355_s16), 0  ;;  %p1511_p5 = pnand %p840_p7, %p124_p4 }
  0x5b   : > { %s1831_s10 = smov (!%p840_p7, %s811_s10), [#allocation15]  ;;  %s1833_s16 = smov (!%p840_p7, %s1829_s16), 0 }
  0x5c   : > { %s224_s25 = sld [smem:[%s1831_s10 + %s1833_s16]]  ;;  %s772_s15 = sshll.u32 %s1787_s11, 5 }
  0x5d   : > { %s221_s8 = scalar_lea.vmem [#allocation10], %s753_s19  ;;  %s1791_s17 = sld [smem:[#allocation35_spill]] }
  0x5e   : > { %s234_s18 = sshll.u32 %s221_s8, 4  ;;  %p1052_p7 = pneg %p1511_p5  ;;  %s235_s18 = int_to_ptr.vmem [resolvable:$true] %s234_s18 }
  0x62   : > { %s229_s5 = sadd.s32 %s772_s15, %s224_s25 }
  0x63   : > { %s757_s24 = sshll.u32 %s229_s5, 3  ;;  %s1055_s10 = scalar_lea.hbm %s1791_s17, 512 }
  0x64   : > { %s231_s29 = scalar_lea.hbm %s1791_s17, %s757_s24 }
  0x65   : > { %s232_s14 = sshll.u32 %s231_s29, 4  ;;  %s233_s14 = int_to_ptr.hbm [resolvable:$true] %s232_s14 }
  0x66   : > { %s1048_s2 = sshra.s32 %s233_s14, 4  ;;  %s1049_s2 = int_to_ptr.hbm [resolvable:$true] %s1048_s2 }
  0x67   : > { %s1050_s27 = scalar_lea.hbm %s1049_s2, 128  ;;  %p1056_p0 = scmp.lt.s32.totalorder %s1049_s2, %s1791_s17 }
  0x68   : > { %p1051_p3 = scmp.ne.s32.totalorder %s1049_s2, %s1050_s27  ;;  %p1057_p1 = scmp.lt.s32.totalorder %s1055_s10, %s1050_s27 }
  0x6a   : > { %p1053_p11 = pnand %p1052_p7, %p1051_p3  ;;  %p1058_p4 = por %p1057_p1, %p1056_p0 }
  0x6c   : > { %p1054_p8 = pneg %p1053_p11 }
  0x6e   : > { %p1059_p9 = pnand %p1058_p4, %p1054_p8 }
  0x70   : > { %1062 = shalt.err (!%p1059_p9)
}
  0x71   : > { %s1241_s3 = smov 256   ;;  %s1792_s29 = smov 8  }
  0x72   : > { %834 = dma.hbm_to_vmem [thread:$0]  (!%p1511_p5), %s233_s14, 2048, %s235_s18, %s1422_s4, %s1241_s3, %s1788_s21, %s1792_s29  }
  0x73   : > { %246 = sbr.rel (%p1477_p6) target bundleno = 673 (0x2a1), region = 32  ;;  %s248_s7 = sand.u32 (!%p1477_p6), 1, %s1419_s23  }
  0x74   : > { %s250_s15 = sand.u32 (!%p1477_p6), 1, %s1210_s6   ;;  %s249_s27 = scalar_lea.sflag (!%p1477_p6), [#allocation6], %s248_s7 }
  0x75   : > { %s759_s8 = sshll.u32 (!%p1477_p6), %s250_s15, 7 }
  0x76   : > { %s1536_s5 = scalar_lea.vmem (!%p1477_p6), [#allocation5], %s759_s8 }
  0x78   : > { %1165 = dma.done.wait (%p1449_p12), %s249_s27, 2048  }
  0x79   : > { %1167 = vsyncadd (%p1449_p12), %s249_s27, 4294965248  ;;  %p1793_p9 = scmp.eq.s32.totalorder %s1419_s23, 0 }
  0x7b   : > { %1169 = dma.done.wait (%p1793_p9), [#allocation9], 2048   ;;  %p1794_p5 = pmov %p1793_p9 }
  0x7c   : > { %s265_s4 = sand.u32 1, %s1198_s28  }
  0x7d   : > { %1171 = vsyncadd (%p1794_p5), [#allocation9], 4294965248  ;;  %s761_s14 = sshll.u32 %s265_s4, 7 }
  0x7e   : > { %s1547_s9 = scalar_lea.vmem [#allocation10], %s761_s14 }
  0x7f   : > { %1173 = dma.done.wait (%p1455_p13), %s249_s27, 2048  }
  0x80   : > { %1175 = vsyncadd (%p1455_p13), %s249_s27, 4294965248  ;;  %s293_s13 = sand.u32 1, %s1186_s0   ;;  %s1795_s23 = sld [smem:[#allocation24_spill]] }
  0x81   : > { %s762_s21 = sshll.u32 %s293_s13, 7 }
  0x82   : > { %s1556_s22 = scalar_lea.vmem [#allocation11], %s762_s21 }
  0x86   : > { %p763_p12 = scmp.ne.s32.totalorder %s1795_s23, 0 }
  0x88   : > { %308 = sbr.rel (%p763_p12) target bundleno = 158 (0x9e), region = 48 }
  0x8d   : > { %v1242_v0 = vmov 0.0  }
  0x8e   : > { %309 = vst [vmem:[%s1556_s22] sm:$0xff] %v1242_v0 }
  0x8f   : > { %310 = vst [vmem:[%s1556_s22 + $0x8] sm:$0xff] %v1242_v0 }
  0x90   : > { %311 = vst [vmem:[%s1556_s22 + $0x10] sm:$0xff] %v1242_v0 }
  0x91   : > { %312 = vst [vmem:[%s1556_s22 + $0x18] sm:$0xff] %v1242_v0 }
  0x92   : > { %313 = vst [vmem:[%s1556_s22 + $0x20] sm:$0xff] %v1242_v0 }
  0x93   : > { %314 = vst [vmem:[%s1556_s22 + $0x28] sm:$0xff] %v1242_v0 }
  0x94   : > { %315 = vst [vmem:[%s1556_s22 + $0x30] sm:$0xff] %v1242_v0 }
  0x95   : > { %316 = vst [vmem:[%s1556_s22 + $0x38] sm:$0xff] %v1242_v0 }
  0x96   : > { %317 = vst [vmem:[%s1556_s22 + $0x40] sm:$0xff] %v1242_v0 }
  0x97   : > { %318 = vst [vmem:[%s1556_s22 + $0x48] sm:$0xff] %v1242_v0 }
  0x98   : > { %319 = vst [vmem:[%s1556_s22 + $0x50] sm:$0xff] %v1242_v0 }
  0x99   : > { %320 = vst [vmem:[%s1556_s22 + $0x58] sm:$0xff] %v1242_v0 }
  0x9a   : > { %321 = vst [vmem:[%s1556_s22 + $0x60] sm:$0xff] %v1242_v0 }
  0x9b   : > { %322 = vst [vmem:[%s1556_s22 + $0x68] sm:$0xff] %v1242_v0 }
  0x9c   : > { %323 = vst [vmem:[%s1556_s22 + $0x70] sm:$0xff] %v1242_v0 }
  0x9d   : > { %324 = vst [vmem:[%s1556_s22 + $0x78] sm:$0xff] %v1242_v0 }
  0x9e PF: > { %s1796_s20 = sld [smem:[#allocation25_spill]] }
  0x9f   : > { %s1797_s24 = sld [smem:[#allocation24_spill]] }
  0xa4   : > { %s325_s18 = sld [smem:[#allocation3 + %s1796_s20]] }
  0xaa   : > { %p764_p13 = scmp.ge.s32.totalorder %s1797_s24, %s325_s18 }
  0xac   : > { %329 = sbr.rel (%p764_p13) target bundleno = 619 (0x26b), region = 52 }
  0xb1   : > { %v361_v1 = vld [vmem:[#allocation8 + $0x78] sm:$0xff]  ;;  %v360_v2 = vld [vmem:[#allocation8 + $0x70] sm:$0xff]  ;;  %v359_v3 = vld [vmem:[#allocation8 + $0x68] sm:$0xff] }
  0xb2   : > { %774 = vmatpush.msra.mxu2 %v361_v1  ;;  %362 = vmatpush.msra.mxu0 %v361_v1  ;;  %v358_v4 = vld [vmem:[#allocation8 + $0x60] sm:$0xff]  ;;  %v357_v5 = vld [vmem:[#allocation8 + $0x58] sm:$0xff]  ;;  %v356_v6 = vld [vmem:[#allocation8 + $0x50] sm:$0xff] }
  0xb3   : > { %v355_v7 = vld [vmem:[#allocation8 + $0x48] sm:$0xff]  ;;  %v354_v8 = vld [vmem:[#allocation8 + $0x40] sm:$0xff]  ;;  %v353_v9 = vld [vmem:[#allocation8 + $0x38] sm:$0xff] }
  0xb4   : > { %775 = vmatpush.msra.mxu2 %v360_v2  ;;  %363 = vmatpush.msra.mxu0 %v360_v2  ;;  %v352_v10 = vld [vmem:[#allocation8 + $0x30] sm:$0xff]  ;;  %v351_v11 = vld [vmem:[#allocation8 + $0x28] sm:$0xff]  ;;  %v350_v12 = vld [vmem:[#allocation8 + $0x20] sm:$0xff] }
  0xb5   : > { %v349_v13 = vld [vmem:[#allocation8 + $0x18] sm:$0xff]  ;;  %v348_v14 = vld [vmem:[#allocation8 + $0x10] sm:$0xff]  ;;  %v347_v15 = vld [vmem:[#allocation8 + $0x8] sm:$0xff] }
  0xb6   : > { %776 = vmatpush.msra.mxu2 %v359_v3  ;;  %364 = vmatpush.msra.mxu0 %v359_v3  ;;  %v346_v16 = vld [vmem:[#allocation8] sm:$0xff]  ;;  %v339_v19 = vld [vmem:[%s1536_s5 + $0x48] sm:$0xff]  ;;  %v340_v21 = vld [vmem:[%s1536_s5 + $0x50] sm:$0xff] }
  0xb7   : > { %v338_v17 = vld [vmem:[%s1536_s5 + $0x40] sm:$0xff]  ;;  %v331_v20 = vld [vmem:[%s1536_s5 + $0x8] sm:$0xff]  ;;  %v332_v22 = vld [vmem:[%s1536_s5 + $0x10] sm:$0xff] }
  0xb8   : > { %777 = vmatpush.msra.mxu2 %v358_v4  ;;  %365 = vmatpush.msra.mxu0 %v358_v4  ;;  %v330_v18 = vld [vmem:[%s1536_s5] sm:$0xff]  ;;  %v341_v23 = vld [vmem:[%s1536_s5 + $0x58] sm:$0xff]  ;;  %v343_v27 = vld [vmem:[%s1536_s5 + $0x68] sm:$0xff] }
  0xb9   : > { %v333_v24 = vld [vmem:[%s1536_s5 + $0x18] sm:$0xff]  ;;  %v342_v25 = vld [vmem:[%s1536_s5 + $0x60] sm:$0xff]  ;;  %v335_v28 = vld [vmem:[%s1536_s5 + $0x28] sm:$0xff] }
  0xba   : > { %778 = vmatpush.msra.mxu2 %v357_v5  ;;  %366 = vmatpush.msra.mxu0 %v357_v5  ;;  %v334_v26 = vld [vmem:[%s1536_s5 + $0x20] sm:$0xff]  ;;  %v344_v29 = vld [vmem:[%s1536_s5 + $0x70] sm:$0xff]  ;;  %v345_v31 = vld [vmem:[%s1536_s5 + $0x78] sm:$0xff] }
  0xbb   : > { %v336_v30 = vld [vmem:[%s1536_s5 + $0x30] sm:$0xff]  ;;  %v337_v32 = vld [vmem:[%s1536_s5 + $0x38] sm:$0xff]  ;;  %v451_v49 = vld [vmem:[%s1547_s9 + $0x40] sm:$0xff] }
  0xbc   : > { %779 = vmatpush.msra.mxu2 %v356_v6  ;;  %367 = vmatpush.msra.mxu0 %v356_v6  ;;  %v443_v50 = vld [vmem:[%s1547_s9] sm:$0xff]  ;;  %v452_v51 = vld [vmem:[%s1547_s9 + $0x48] sm:$0xff]  ;;  %v453_v53 = vld [vmem:[%s1547_s9 + $0x50] sm:$0xff] }
  0xbd   : > { %v444_v52 = vld [vmem:[%s1547_s9 + $0x8] sm:$0xff]  ;;  %v445_v54 = vld [vmem:[%s1547_s9 + $0x10] sm:$0xff]  ;;  %v454_v55 = vld [vmem:[%s1547_s9 + $0x58] sm:$0xff] }
  0xbe   : > { %780 = vmatpush.msra.mxu2 %v355_v7  ;;  %368 = vmatpush.msra.mxu0 %v355_v7  ;;  %v446_v56 = vld [vmem:[%s1547_s9 + $0x18] sm:$0xff]  ;;  %v455_v57 = vld [vmem:[%s1547_s9 + $0x60] sm:$0xff]  ;;  %v456_v59 = vld [vmem:[%s1547_s9 + $0x68] sm:$0xff] }
  0xbf   : > { %v447_v58 = vld [vmem:[%s1547_s9 + $0x20] sm:$0xff]  ;;  %v448_v60 = vld [vmem:[%s1547_s9 + $0x28] sm:$0xff]  ;;  %v457_v61 = vld [vmem:[%s1547_s9 + $0x70] sm:$0xff] }
  0xc0   : > { %781 = vmatpush.msra.mxu2 %v354_v8  ;;  %369 = vmatpush.msra.mxu0 %v354_v8  ;;  %v449_v62 = vld [vmem:[%s1547_s9 + $0x30] sm:$0xff]  ;;  %v458_v63 = vld [vmem:[%s1547_s9 + $0x78] sm:$0xff]  ;;  %v427_v1 = vld [vmem:[%s1556_s22] sm:$0xff] }
  0xc1   : > { %v450_v0 = vld [vmem:[%s1547_s9 + $0x38] sm:$0xff]  ;;  %v435_v4 = vld [vmem:[%s1556_s22 + $0x40] sm:$0xff]  ;;  %v428_v6 = vld [vmem:[%s1556_s22 + $0x8] sm:$0xff] }
  0xc2   : > { %782 = vmatpush.msra.mxu2 %v353_v9  ;;  %370 = vmatpush.msra.mxu0 %v353_v9 }
  0xc4   : > { %783 = vmatpush.msra.mxu2 %v352_v10  ;;  %371 = vmatpush.msra.mxu0 %v352_v10  ;;  %v436_v10 = vld [vmem:[%s1556_s22 + $0x48] sm:$0xff] }
  0xc6   : > { %784 = vmatpush.msra.mxu2 %v351_v11  ;;  %372 = vmatpush.msra.mxu0 %v351_v11 }
  0xc8   : > { %785 = vmatpush.msra.mxu2 %v350_v12  ;;  %373 = vmatpush.msra.mxu0 %v350_v12  ;;  %v429_v12 = vld [vmem:[%s1556_s22 + $0x10] sm:$0xff] }
  0xca   : > { %786 = vmatpush.msra.mxu2 %v349_v13  ;;  %374 = vmatpush.msra.mxu0 %v349_v13 }
  0xcc   : > { %787 = vmatpush.msra.mxu2 %v348_v14  ;;  %375 = vmatpush.msra.mxu0 %v348_v14 }
  0xce   : > { %788 = vmatpush.msra.mxu2 %v347_v15  ;;  %376 = vmatpush.msra.mxu0 %v347_v15 }
  0xd0   : > { %789 = vmatpush.msra.mxu2 %v346_v16  ;;  %377 = vmatpush.msra.mxu0 %v346_v16  ;;  %v437_v16 = vld [vmem:[%s1556_s22 + $0x50] sm:$0xff] }
  0xd1   : > { %402 = vmatmul.f32.vlgmr.msra.gmra.mxu2 %v338_v17  ;;  %378 = vmatmul.f32.vlgmr.msra.gmra.mxu0 %v330_v18  ;;  %v430_v18 = vld [vmem:[%s1556_s22 + $0x18] sm:$0xff] }
  0xd9   : > { %405 = vmatmul.f32.gmra.mxu2 %v339_v19  ;;  %381 = vmatmul.f32.gmra.mxu0 %v331_v20 }
  0xe1   : > { %408 = vmatmul.f32.gmra.mxu2 %v340_v21  ;;  %384 = vmatmul.f32.gmra.mxu0 %v332_v22  ;;  %v438_v22 = vld [vmem:[%s1556_s22 + $0x58] sm:$0xff] }
  0xe9   : > { %411 = vmatmul.f32.gmra.mxu2 %v341_v23  ;;  %387 = vmatmul.f32.gmra.mxu0 %v333_v24  ;;  %v431_v24 = vld [vmem:[%s1556_s22 + $0x20] sm:$0xff] }
  0xf1   : > { %414 = vmatmul.f32.gmra.mxu2 %v342_v25  ;;  %390 = vmatmul.f32.gmra.mxu0 %v334_v26 }
  0xf9   : > { %417 = vmatmul.f32.gmra.mxu2 %v343_v27  ;;  %393 = vmatmul.f32.gmra.mxu0 %v335_v28  ;;  %v439_v28 = vld [vmem:[%s1556_s22 + $0x60] sm:$0xff] }
 0x101   : > { %420 = vmatmul.f32.gmra.mxu2 %v344_v29  ;;  %396 = vmatmul.f32.gmra.mxu0 %v336_v30  ;;  %v432_v30 = vld [vmem:[%s1556_s22 + $0x28] sm:$0xff] }
 0x109   : > { %423 = vmatmul.f32.gmra.mxu2 %v345_v31  ;;  %399 = vmatmul.f32.gmra.mxu0 %v337_v32 }
 0x14e   : > { %v379_v34 = vpop.f32.mrf.mxu0 }
 0x154   : > { %v403_v33 = vpop.f32.mrf.mxu2 }
 0x156   : > { %v382_v36 = vpop.f32.mrf.mxu0 }
 0x15c   : > { %v406_v35 = vpop.f32.mrf.mxu2 }
 0x15e   : > { %v385_v38 = vpop.f32.mrf.mxu0 }
 0x164   : > { %v409_v37 = vpop.f32.mrf.mxu2 }
 0x166   : > { %v388_v40 = vpop.f32.mrf.mxu0 }
 0x16c   : > { %v412_v39 = vpop.f32.mrf.mxu2 }
 0x16e   : > { %v391_v43 = vpop.f32.mrf.mxu0 }
 0x174   : > { %v415_v41 = vpop.f32.mrf.mxu2 }
 0x176   : > { %v394_v45 = vpop.f32.mrf.mxu0 }
 0x17c   : > { %v418_v42 = vpop.f32.mrf.mxu2 }
 0x17e   : > { %v397_v47 = vpop.f32.mrf.mxu0 }
 0x184   : > { %v421_v44 = vpop.f32.mrf.mxu2 }
 0x186   : > { %v400_v48 = vpop.f32.mrf.mxu0 }
 0x18c   : > { %v424_v46 = vpop.f32.mrf.mxu2 }
 0x18d   : > { %459 = vmatpush.msra.mxu1 %v424_v46  ;;  %790 = vmatpush.msra.mxu3 %v424_v46  ;;  %v442_v46 = vld [vmem:[%s1556_s22 + $0x78] sm:$0xff] }
 0x18f   : > { %460 = vmatpush.msra.mxu1 %v421_v44  ;;  %791 = vmatpush.msra.mxu3 %v421_v44 }
 0x191   : > { %461 = vmatpush.msra.mxu1 %v418_v42  ;;  %792 = vmatpush.msra.mxu3 %v418_v42  ;;  %v434_v42 = vld [vmem:[%s1556_s22 + $0x38] sm:$0xff] }
 0x193   : > { %462 = vmatpush.msra.mxu1 %v415_v41  ;;  %793 = vmatpush.msra.mxu3 %v415_v41 }
 0x195   : > { %463 = vmatpush.msra.mxu1 %v412_v39  ;;  %794 = vmatpush.msra.mxu3 %v412_v39 }
 0x197   : > { %464 = vmatpush.msra.mxu1 %v409_v37  ;;  %795 = vmatpush.msra.mxu3 %v409_v37 }
 0x199   : > { %465 = vmatpush.msra.mxu1 %v406_v35  ;;  %796 = vmatpush.msra.mxu3 %v406_v35 }
 0x19b   : > { %466 = vmatpush.msra.mxu1 %v403_v33  ;;  %797 = vmatpush.msra.mxu3 %v403_v33 }
 0x19d   : > { %467 = vmatpush.msra.mxu1 %v400_v48  ;;  %798 = vmatpush.msra.mxu3 %v400_v48 }
 0x19f   : > { %468 = vmatpush.msra.mxu1 %v397_v47  ;;  %799 = vmatpush.msra.mxu3 %v397_v47 }
 0x1a1   : > { %469 = vmatpush.msra.mxu1 %v394_v45  ;;  %800 = vmatpush.msra.mxu3 %v394_v45 }
 0x1a3   : > { %470 = vmatpush.msra.mxu1 %v391_v43  ;;  %801 = vmatpush.msra.mxu3 %v391_v43 }
 0x1a5   : > { %471 = vmatpush.msra.mxu1 %v388_v40  ;;  %802 = vmatpush.msra.mxu3 %v388_v40  ;;  %v441_v40 = vld [vmem:[%s1556_s22 + $0x70] sm:$0xff] }
 0x1a7   : > { %472 = vmatpush.msra.mxu1 %v385_v38  ;;  %803 = vmatpush.msra.mxu3 %v385_v38 }
 0x1a9   : > { %473 = vmatpush.msra.mxu1 %v382_v36  ;;  %804 = vmatpush.msra.mxu3 %v382_v36  ;;  %v433_v36 = vld [vmem:[%s1556_s22 + $0x30] sm:$0xff] }
 0x1ab   : > { %474 = vmatpush.msra.mxu1 %v379_v34  ;;  %805 = vmatpush.msra.mxu3 %v379_v34  ;;  %v440_v34 = vld [vmem:[%s1556_s22 + $0x68] sm:$0xff] }
 0x1ac   : > { %499 = vmatmul.f32.vlgmr.msra.gmra.mxu3 %v451_v49  ;;  %475 = vmatmul.f32.vlgmr.msra.gmra.mxu1 %v443_v50 }
 0x1b4   : > { %502 = vmatmul.f32.gmra.mxu3 %v452_v51  ;;  %478 = vmatmul.f32.gmra.mxu1 %v444_v52 }
 0x1bc   : > { %505 = vmatmul.f32.gmra.mxu3 %v453_v53  ;;  %481 = vmatmul.f32.gmra.mxu1 %v445_v54 }
 0x1c4   : > { %508 = vmatmul.f32.gmra.mxu3 %v454_v55  ;;  %484 = vmatmul.f32.gmra.mxu1 %v446_v56 }
 0x1cc   : > { %511 = vmatmul.f32.gmra.mxu3 %v455_v57  ;;  %487 = vmatmul.f32.gmra.mxu1 %v447_v58 }
 0x1d4   : > { %514 = vmatmul.f32.gmra.mxu3 %v456_v59  ;;  %490 = vmatmul.f32.gmra.mxu1 %v448_v60 }
 0x1dc   : > { %517 = vmatmul.f32.gmra.mxu3 %v457_v61  ;;  %493 = vmatmul.f32.gmra.mxu1 %v449_v62 }
 0x1e4   : > { %520 = vmatmul.f32.gmra.mxu3 %v458_v63  ;;  %496 = vmatmul.f32.gmra.mxu1 %v450_v0 }
 0x229   : > { %v476_v2 = vpop.f32.mrf.mxu1 }
 0x22a   : > { %v524_v3 = vadd.f32 %v476_v2, %v427_v1 }
 0x22c   : > { %540 = vst [vmem:[%s1556_s22] sm:$0xff] %v524_v3 }
 0x22f   : > { %v500_v5 = vpop.f32.mrf.mxu3 }
 0x230   : > { %v532_v7 = vadd.f32 %v500_v5, %v435_v4 }
 0x231   : > { %v479_v8 = vpop.f32.mrf.mxu1 }
 0x232   : > { %548 = vst [vmem:[%s1556_s22 + $0x40] sm:$0xff] %v532_v7  ;;  %v525_v9 = vadd.f32 %v479_v8, %v428_v6 }
 0x234   : > { %541 = vst [vmem:[%s1556_s22 + $0x8] sm:$0xff] %v525_v9 }
 0x237   : > { %v503_v11 = vpop.f32.mrf.mxu3 }
 0x238   : > { %v533_v13 = vadd.f32 %v503_v11, %v436_v10 }
 0x239   : > { %v482_v14 = vpop.f32.mrf.mxu1 }
 0x23a   : > { %549 = vst [vmem:[%s1556_s22 + $0x48] sm:$0xff] %v533_v13  ;;  %v526_v15 = vadd.f32 %v482_v14, %v429_v12 }
 0x23c   : > { %542 = vst [vmem:[%s1556_s22 + $0x10] sm:$0xff] %v526_v15 }
 0x23f   : > { %v506_v17 = vpop.f32.mrf.mxu3 }
 0x240   : > { %v534_v19 = vadd.f32 %v506_v17, %v437_v16 }
 0x241   : > { %v485_v20 = vpop.f32.mrf.mxu1 }
 0x242   : > { %550 = vst [vmem:[%s1556_s22 + $0x50] sm:$0xff] %v534_v19  ;;  %v527_v21 = vadd.f32 %v485_v20, %v430_v18 }
 0x244   : > { %543 = vst [vmem:[%s1556_s22 + $0x18] sm:$0xff] %v527_v21 }
 0x247   : > { %v509_v23 = vpop.f32.mrf.mxu3 }
 0x248   : > { %v535_v25 = vadd.f32 %v509_v23, %v438_v22 }
 0x249   : > { %v488_v26 = vpop.f32.mrf.mxu1 }
 0x24a   : > { %551 = vst [vmem:[%s1556_s22 + $0x58] sm:$0xff] %v535_v25  ;;  %v528_v27 = vadd.f32 %v488_v26, %v431_v24 }
 0x24c   : > { %544 = vst [vmem:[%s1556_s22 + $0x20] sm:$0xff] %v528_v27 }
 0x24f   : > { %v512_v29 = vpop.f32.mrf.mxu3 }
 0x250   : > { %v536_v31 = vadd.f32 %v512_v29, %v439_v28 }
 0x251   : > { %v491_v32 = vpop.f32.mrf.mxu1 }
 0x252   : > { %552 = vst [vmem:[%s1556_s22 + $0x60] sm:$0xff] %v536_v31  ;;  %v529_v33 = vadd.f32 %v491_v32, %v432_v30 }
 0x254   : > { %545 = vst [vmem:[%s1556_s22 + $0x28] sm:$0xff] %v529_v33 }
 0x257   : > { %v515_v35 = vpop.f32.mrf.mxu3 }
 0x258   : > { %v537_v37 = vadd.f32 %v515_v35, %v440_v34 }
 0x259   : > { %v494_v38 = vpop.f32.mrf.mxu1 }
 0x25a   : > { %553 = vst [vmem:[%s1556_s22 + $0x68] sm:$0xff] %v537_v37  ;;  %v530_v39 = vadd.f32 %v494_v38, %v433_v36 }
 0x25c   : > { %546 = vst [vmem:[%s1556_s22 + $0x30] sm:$0xff] %v530_v39 }
 0x25f   : > { %v518_v41 = vpop.f32.mrf.mxu3 }
 0x260   : > { %v538_v43 = vadd.f32 %v518_v41, %v441_v40 }
 0x261   : > { %v497_v44 = vpop.f32.mrf.mxu1 }
 0x262   : > { %554 = vst [vmem:[%s1556_s22 + $0x70] sm:$0xff] %v538_v43  ;;  %v531_v45 = vadd.f32 %v497_v44, %v434_v42 }
 0x264   : > { %547 = vst [vmem:[%s1556_s22 + $0x38] sm:$0xff] %v531_v45 }
 0x267   : > { %v521_v47 = vpop.f32.mrf.mxu3 }
 0x268   : > { %v539_v48 = vadd.f32 %v521_v47, %v442_v46 }
 0x26a   : > { %555 = vst [vmem:[%s1556_s22 + $0x78] sm:$0xff] %v539_v48 }
 0x26b PF: > { %s1798_s2 = sld [smem:[#allocation24_spill]] }
 0x271   : > { %p765_p6 = scmp.ne.s32.totalorder %s1798_s2, 1 }
 0x273   : > { %559 = sbr.rel (%p765_p6) target bundleno = 651 (0x28b), region = 56 }
 0x278   : > { %v560_v49 = vld [vmem:[%s1556_s22] sm:$0xff]  ;;  %v561_v50 = vld [vmem:[%s1556_s22 + $0x8] sm:$0xff]  ;;  %v562_v51 = vld [vmem:[%s1556_s22 + $0x10] sm:$0xff] }
 0x279   : > { %v576_v52 = vmax.f32 %v560_v49, 0.0  ;;  %v577_v53 = vmax.f32 %v561_v50, 0.0  ;;  %v578_v54 = vmax.f32 %v562_v51, 0.0  ;;  %v563_v55 = vld [vmem:[%s1556_s22 + $0x18] sm:$0xff]  ;;  %v564_v56 = vld [vmem:[%s1556_s22 + $0x20] sm:$0xff]  ;;  %v565_v57 = vld [vmem:[%s1556_s22 + $0x28] sm:$0xff] }
 0x27a   : > { %v579_v58 = vmax.f32 %v563_v55, 0.0  ;;  %v566_v59 = vld [vmem:[%s1556_s22 + $0x30] sm:$0xff]  ;;  %v580_v60 = vmax.f32 %v564_v56, 0.0  ;;  %v567_v61 = vld [vmem:[%s1556_s22 + $0x38] sm:$0xff]  ;;  %v581_v62 = vmax.f32 %v565_v57, 0.0  ;;  %v568_v63 = vld [vmem:[%s1556_s22 + $0x40] sm:$0xff] }
 0x27b   : > { %592 = vst [vmem:[%s1556_s22] sm:$0xff] %v576_v52  ;;  %v582_v0 = vmax.f32 %v566_v59, 0.0  ;;  %v569_v1 = vld [vmem:[%s1556_s22 + $0x48] sm:$0xff]  ;;  %v583_v2 = vmax.f32 %v567_v61, 0.0  ;;  %v570_v3 = vld [vmem:[%s1556_s22 + $0x50] sm:$0xff]  ;;  %v584_v4 = vmax.f32 %v568_v63, 0.0  ;;  %v571_v5 = vld [vmem:[%s1556_s22 + $0x58] sm:$0xff] }
 0x27c   : > { %593 = vst [vmem:[%s1556_s22 + $0x8] sm:$0xff] %v577_v53  ;;  %v585_v6 = vmax.f32 %v569_v1, 0.0  ;;  %v572_v7 = vld [vmem:[%s1556_s22 + $0x60] sm:$0xff]  ;;  %v586_v8 = vmax.f32 %v570_v3, 0.0  ;;  %v573_v9 = vld [vmem:[%s1556_s22 + $0x68] sm:$0xff]  ;;  %v587_v10 = vmax.f32 %v571_v5, 0.0 }
 0x27d   : > { %594 = vst [vmem:[%s1556_s22 + $0x10] sm:$0xff] %v578_v54  ;;  %v574_v11 = vld [vmem:[%s1556_s22 + $0x70] sm:$0xff]  ;;  %v588_v12 = vmax.f32 %v572_v7, 0.0  ;;  %v575_v13 = vld [vmem:[%s1556_s22 + $0x78] sm:$0xff]  ;;  %v589_v14 = vmax.f32 %v573_v9, 0.0 }
 0x27e   : > { %595 = vst [vmem:[%s1556_s22 + $0x18] sm:$0xff] %v579_v58  ;;  %v590_v15 = vmax.f32 %v574_v11, 0.0  ;;  %v591_v16 = vmax.f32 %v575_v13, 0.0 }
 0x27f   : > { %596 = vst [vmem:[%s1556_s22 + $0x20] sm:$0xff] %v580_v60 }
 0x280   : > { %597 = vst [vmem:[%s1556_s22 + $0x28] sm:$0xff] %v581_v62 }
 0x281   : > { %598 = vst [vmem:[%s1556_s22 + $0x30] sm:$0xff] %v582_v0 }
 0x282   : > { %599 = vst [vmem:[%s1556_s22 + $0x38] sm:$0xff] %v583_v2 }
 0x283   : > { %600 = vst [vmem:[%s1556_s22 + $0x40] sm:$0xff] %v584_v4 }
 0x284   : > { %601 = vst [vmem:[%s1556_s22 + $0x48] sm:$0xff] %v585_v6 }
 0x285   : > { %602 = vst [vmem:[%s1556_s22 + $0x50] sm:$0xff] %v586_v8 }
 0x286   : > { %603 = vst [vmem:[%s1556_s22 + $0x58] sm:$0xff] %v587_v10 }
 0x287   : > { %604 = vst [vmem:[%s1556_s22 + $0x60] sm:$0xff] %v588_v12 }
 0x288   : > { %605 = vst [vmem:[%s1556_s22 + $0x68] sm:$0xff] %v589_v14 }
 0x289   : > { %606 = vst [vmem:[%s1556_s22 + $0x70] sm:$0xff] %v590_v15 }
 0x28a   : > { %607 = vst [vmem:[%s1556_s22 + $0x78] sm:$0xff] %v591_v16 }
 0x28b PF: > { %s1799_s16 = sld [smem:[#allocation25_spill]]  ;;  %s621_s29 = sshll.u32 %s1556_s22, 4  ;;  %s622_s29 = int_to_ptr.vmem [resolvable:$true] %s621_s29 }
 0x28c   : > { %s1800_s25 = sld [smem:[#allocation36_spill]]  ;;  %s609_s15 = scalar_lea.sflag [#allocation7], %s293_s13 }
 0x291   : > { %s773_s11 = sshll.u32 %s1799_s16, 7 }
 0x292   : > { %s620_s3 = scalar_lea.hbm %s1800_s25, %s773_s11  ;;  %s1098_s14 = scalar_lea.hbm %s1800_s25, 256 }
 0x293   : > { %s623_s7 = sshll.u32 %s620_s3, 4  ;;  %s624_s7 = int_to_ptr.hbm [resolvable:$true] %s623_s7 }
 0x294   : > { %s1092_s8 = sshra.s32 %s624_s7, 4  ;;  %s1093_s8 = int_to_ptr.hbm [resolvable:$true] %s1092_s8 }
 0x295   : > { %s1094_s27 = scalar_lea.hbm %s1093_s8, 128  ;;  %p1099_p8 = scmp.lt.s32.totalorder %s1093_s8, %s1800_s25 }
 0x296   : > { %p1095_p3 = scmp.ne.s32.totalorder %s1093_s8, %s1094_s27  ;;  %p1100_p0 = scmp.lt.s32.totalorder %s1098_s14, %s1094_s27 }
 0x298   : > { %p1096_p7 = pnand %p1095_p3, %p1468_p2  ;;  %p1101_p1 = por %p1100_p0, %p1099_p8 }
 0x29a   : > { %p1097_p11 = pneg %p1096_p7 }
 0x29c   : > { %p1102_p4 = pnand %p1101_p1, %p1097_p11 }
 0x29e   : > { %1105 = shalt.err (!%p1102_p4)
}
 0x29f   : > { %s1243_s13 = smov 128   ;;  %s1244_s22 = smov 8  }
 0x2a0   : > { %818 = dma.vmem_to_hbm [thread:$0]  (%p1468_p2), %s622_s29, 2048, %s624_s7, %s609_s15, %s1243_s13, %s1243_s13, %s1244_s22  }
 0x2a1 PF: > { %p842_p9 = scmp.ge.s32.totalorder %s1234_s12, 2  ;;  %s638_s23 = sand.u32 1, %s1182_s26  }
 0x2a2   : > { %s639_s20 = scalar_lea.sflag [#allocation7], %s638_s23 }
 0x2a3   : > { %p836_p5 = pnand %p842_p9, %p1473_p10 }
 0x2a5   : > { %p837_p12 = pneg %p836_p5 }
 0x2a7   : > { %1177 = dma.done.wait (%p837_p12), %s639_s20, 2048  }
 0x2a8   : > { %1179 = vsyncadd (%p837_p12), %s639_s20, 4294965248  ;;  %s35_s12 = sadd.s32 1, %s1234_s12   ;;  %s1802_s1 = sld [smem:[#allocation21_spill]] }
 0x2a9   : > { %p1696_p13 = scmp.ge.s32.totalorder %s35_s12, 6   ;;  %s1803_s27 = sld [smem:[#allocation31_spill]] }
 0x2aa   : > { %s1804_s24 = sld [smem:[#allocation22_spill]]  ;;  %s1812_s26 = smov %s1186_s0 }
 0x2ab   : > { %s1805_s29 = sld [smem:[#allocation32_spill]]  ;;  %s1816_s30 = smov %s1210_s6 }
 0x2ac   : > { %s1806_s2 = sld [smem:[#allocation23_spill]] }
 0x2ad   : > { %s1807_s7 = sld [smem:[#allocation30_spill]] }
 0x2ae   : > { %s1808_s8 = sld [smem:[#allocation26_spill]]  ;;  %s1813_s0 = smov %s1802_s1 }
 0x2af   : > { %s1809_s9 = sld [smem:[#allocation27_spill]]  ;;  %s1814_s1 = smov %s1198_s28 }
 0x2b0   : > { %s1810_s10 = sld [smem:[#allocation28_spill]]  ;;  %s1815_s28 = smov %s1804_s24 }
 0x2b1   : > { %s1811_s11 = sld [smem:[#allocation29_spill]]  ;;  %34 = sbr.rel (!%p1696_p13) target bundleno = 21 (0x15), region = 104 }
 0x2b2   : > { %s1817_s6 = smov %s1806_s2 }
 0x2b6   :  { %645 = vsyncpa [#allocation6], 1 }
 0x2b7   :  { %647 = vsyncpa [#allocation6 + $0x1], 1 }
 0x2b8   :  { %648 = vsyncpa [#allocation9], 1 }
 0x2b9   :  { %649 = vsyncpa [#allocation7], 1 }
 0x2ba   :  { %651 = vsyncpa [#allocation7 + $0x1], 1 }

</bundles_post_ra>
